<compile_context>
chip_gen: v7x
topology: tpu7x:2x2x1
jax: 0.10.0
libtpu: 0.0.40
codegen_flags: <defaults>
</compile_context>

<pallas_src>
import functools

import jax
import jax.numpy as jnp
from jax.experimental import pallas as pl
from jax.experimental.pallas import tpu as pltpu

LN_EPS = 1e-5


def _round_up(n, m):
    return (n + m - 1) // m * m


def _pad_to(a, shape):
    pads = [(0, t - s) for s, t in zip(a.shape, shape)]
    if all(p == (0, 0) for p in pads):
        return a
    return jnp.pad(a, pads)


def encoder_kernel(x_ref, q_ref,
                   w_in_ref, b_in_ref,
                   w_res_ref, b_res_ref, g_ref, beta_ref,
                   w_out_ref, b_out_ref,
                   o_ref,
                   *, n_res_layers, dim_enc):
    mm_dtype = w_res_ref.dtype                 # bf16 or f32 matmul operands
    inv_d = jnp.float32(1.0 / dim_enc)         # LN stats over the REAL width

    # --- input projection (MXU, f32 accumulation) ---
    h = jnp.dot(x_ref[...], w_in_ref[...],
                preferred_element_type=jnp.float32) + b_in_ref[...]

    # Elementwise / LN math stays f32 (also the right choice on v5e).
    q = q_ref[...].astype(jnp.float32)
    w_res = w_res_ref[...]
    b_res = b_res_ref[...]
    gamma = g_ref[...]
    beta = beta_ref[...]

    def res_iter(h):
        r = jnp.dot(h.astype(mm_dtype), w_res,
                    preferred_element_type=jnp.float32) + b_res
        # Fused single-pass LayerNorm statistics.  Padded lanes of r are exactly
        # zero (zero-padded w_res columns / b_res), so dividing by the real
        # dim_enc gives the correct mean/var.
        s = jnp.sum(r, axis=-1, keepdims=True)
        ss = jnp.sum(r * r, axis=-1, keepdims=True)
        mu = s * inv_d
        var = jnp.maximum(ss * inv_d - mu * mu, 0.0)
        r = (r - mu) * jax.lax.rsqrt(var + LN_EPS) * gamma + beta
        r = jnp.maximum(r, 0.0)                # ReLU
        return (h + r) * q                     # residual add, then * q_embedding

    # Parameters are shared across iterations (like the torch ModuleList([blk]*n)).
    if n_res_layers <= 8:
        for _ in range(n_res_layers):          # small: full unroll is cheapest
            h = res_iter(h)
    else:
        # Bound vreg live ranges for deep stacks while keeping LLO visibility.
        h = jax.lax.fori_loop(0, n_res_layers, lambda _, hh: res_iter(hh), h,
                              unroll=2)

    # --- output projection ---
    out = jnp.dot(h.astype(mm_dtype), w_out_ref[...],
                  preferred_element_type=jnp.float32) + b_out_ref[...]
    o_ref[...] = out.astype(o_ref.dtype)


def encoder_forward(x, q_embedding, params, *, n_res_layers,
                    tile_m=256, matmul_dtype=jnp.float32):
    """x: (B, S, in_dim), q_embedding: (B, S, dim_encoder)."""
    B, S, in_dim = x.shape
    dim_enc = params["w_in"].shape[1]
    dim_out = params["w_out"].shape[1]
    out_dtype = x.dtype

    M = B * S

    # Lane-dense padding of every feature dim to a multiple of 128.
    in_dim_p = _round_up(in_dim, 128)
    dim_enc_p = _round_up(dim_enc, 128)
    dim_out_p = _round_up(dim_out, 128)

    # Token tile: multiple of 8 sublanes, no larger than the (padded) row count.
    # For real workloads keep Mp // tile_m >= 2 so v7x's two TensorCores both work.
    tile_m = max(8, min(_round_up(tile_m, 8), _round_up(M, 8)))
    Mp = _round_up(M, tile_m)

    mm_itemsize = jnp.dtype(matmul_dtype).itemsize

    # Streamed activations (cast to the matmul dtype; zero rows/cols are padding).
    x2 = _pad_to(x.reshape(M, in_dim), (Mp, in_dim_p)).astype(matmul_dtype)
    q2 = _pad_to(q_embedding.reshape(M, dim_enc), (Mp, dim_enc_p)).astype(matmul_dtype)

    # Invariant parameters (big matrices in matmul dtype, small vectors in f32).
    w_in = _pad_to(params["w_in"], (in_dim_p, dim_enc_p)).astype(matmul_dtype)
    w_res = _pad_to(params["w_res"], (dim_enc_p, dim_enc_p)).astype(matmul_dtype)
    w_out = _pad_to(params["w_out"], (dim_enc_p, dim_out_p)).astype(matmul_dtype)
    b_in = _pad_to(params["b_in"], (1, dim_enc_p)).astype(jnp.float32)
    b_res = _pad_to(params["b_res"], (1, dim_enc_p)).astype(jnp.float32)
    gamma = _pad_to(params["ln_gamma"], (1, dim_enc_p)).astype(jnp.float32)
    beta = _pad_to(params["ln_beta"], (1, dim_enc_p)).astype(jnp.float32)
    b_out = _pad_to(params["b_out"], (1, dim_out_p)).astype(jnp.float32)

    grid = (Mp // tile_m,)

    row_spec = lambda d: pl.BlockSpec((tile_m, d), lambda i: (i, 0))
    # Whole-array, VMEM-resident, single buffer: no per-step DMA, no double
    # buffering of invariant weights (the Buffered(1) alternative).
    vmem_resident = lambda: pl.BlockSpec(memory_space=pltpu.MemorySpace.VMEM)

    # --- VMEM budget (explicit, with headroom; capped for v7x's 64 MiB) ---
    weight_bytes = (w_in.size + w_res.size + w_out.size) * mm_itemsize \
        + (b_in.size + b_res.size + gamma.size + beta.size + b_out.size) * 4
    stream_bytes = 2 * tile_m * (in_dim_p + dim_enc_p) * mm_itemsize \
        + 2 * tile_m * dim_out_p * jnp.dtype(out_dtype).itemsize
    live_bytes = 4 * tile_m * dim_enc_p * 4        # h, r and temporaries in f32
    est = weight_bytes + stream_bytes + live_bytes
    vmem_limit = int(min(64 * 1024 * 1024, max(32 * 1024 * 1024, 2 * est)))

    # --- cost estimate (advisory, helps XLA schedule around the custom call) ---
    flops = 2 * Mp * (in_dim_p * dim_enc_p
                      + n_res_layers * dim_enc_p * dim_enc_p
                      + dim_enc_p * dim_out_p)
    bytes_accessed = int(x2.size * mm_itemsize + q2.size * mm_itemsize
                         + weight_bytes
                         + Mp * dim_out_p * jnp.dtype(out_dtype).itemsize)
    cost = pl.CostEstimate(flops=flops,
                           transcendentals=Mp * n_res_layers,   # rsqrt per row/layer
                           bytes_accessed=bytes_accessed)

    kernel = functools.partial(encoder_kernel,
                               n_res_layers=n_res_layers, dim_enc=dim_enc)

    out2 = pl.pallas_call(
        kernel,
        out_shape=jax.ShapeDtypeStruct((Mp, dim_out_p), out_dtype),
        grid_spec=pltpu.PrefetchScalarGridSpec(
            num_scalar_prefetch=0,
            grid=grid,
            in_specs=[
                row_spec(in_dim_p),       # x rows (pipelined)
                row_spec(dim_enc_p),      # q_embedding rows (pipelined)
                vmem_resident(),          # w_in
                vmem_resident(),          # b_in
                vmem_resident(),          # w_res (shared across res layers)
                vmem_resident(),          # b_res
                vmem_resident(),          # LN gamma
                vmem_resident(),          # LN beta
                vmem_resident(),          # w_out
                vmem_resident(),          # b_out
            ],
            out_specs=row_spec(dim_out_p),
        ),
        compiler_params=pltpu.CompilerParams(
            dimension_semantics=("parallel",),
            vmem_limit_bytes=vmem_limit),
        cost_estimate=cost,
    )(x2, q2,
      w_in, b_in,
      w_res, b_res,
      gamma, beta,
      w_out, b_out)

    return out2[:M, :dim_out].reshape(B, S, dim_out)


def init_params(key, in_dim, dim_encoder, dim_encoder_out):
    ks = jax.random.split(key, 6)
    scale = 0.05
    return {
        # stored as (fan_in, fan_out) == torch_weight.T
        "w_in":    scale * jax.random.normal(ks[0], (in_dim, dim_encoder), jnp.float32),
        "b_in":    scale * jax.random.normal(ks[1], (1, dim_encoder), jnp.float32),
        "w_res":   scale * jax.random.normal(ks[2], (dim_encoder, dim_encoder), jnp.float32),
        "b_res":   scale * jax.random.normal(ks[3], (1, dim_encoder), jnp.float32),
        "ln_gamma": jnp.ones((1, dim_encoder), jnp.float32),
        "ln_beta":  jnp.zeros((1, dim_encoder), jnp.float32),
        "w_out":   scale * jax.random.normal(ks[4], (dim_encoder, dim_encoder_out), jnp.float32),
        "b_out":   scale * jax.random.normal(ks[5], (1, dim_encoder_out), jnp.float32),
    }


def encoder_ref(x, q_embedding, params, *, n_res_layers):
    """Pure-JAX reference for correctness check."""
    h = x @ params["w_in"] + params["b_in"]
    for _ in range(n_res_layers):
        r = h @ params["w_res"] + params["b_res"]
        mu = jnp.mean(r, axis=-1, keepdims=True)
        var = jnp.mean((r - mu) ** 2, axis=-1, keepdims=True)
        r = (r - mu) * jax.lax.rsqrt(var + LN_EPS) * params["ln_gamma"] + params["ln_beta"]
        r = jnp.maximum(r, 0.0)
        h = (h + r) * q_embedding
    return h @ params["w_out"] + params["b_out"]


if __name__ == "__main__":
    B, S = 2, 8
    in_dim, n_res_layers, dim_encoder, dim_encoder_out = 16, 2, 32, 16

    key = jax.random.PRNGKey(0)
    kx, kq, kp = jax.random.split(key, 3)
    x = jax.random.normal(kx, (B, S, in_dim), jnp.float32)
    q_embedding = jax.random.normal(kq, (B, S, dim_encoder), jnp.float32)
    params = init_params(kp, in_dim, dim_encoder, dim_encoder_out)

    ref = encoder_ref(x, q_embedding, params, n_res_layers=n_res_layers)

    # f32 matmul path: tight correctness check.
    out = encoder_forward(x, q_embedding, params, n_res_layers=n_res_layers)
    out = jax.block_until_ready(out)
    assert out.shape == (B, S, dim_encoder_out)
    assert jnp.allclose(out, ref, atol=1e-4, rtol=1e-4), "f32 mismatch vs reference"

    # bf16 matmul path (production setting on v6e/v7x): smoke test, loose tolerance.
    out_bf16 = encoder_forward(x, q_embedding, params, n_res_layers=n_res_layers,
                               matmul_dtype=jnp.bfloat16)
    out_bf16 = jax.block_until_ready(out_bf16)
    assert out_bf16.shape == (B, S, dim_encoder_out)
    assert jnp.allclose(out_bf16, ref, atol=1.5e-1, rtol=1e-1), "bf16 mismatch vs reference"

    print("KERNEL_OK")
</pallas_src>

<mosaic_0001>
module attributes {stable_mosaic.version = 11 : i64} {
  func.func @encoder_kernel(%arg0: i32, %arg1: memref<16x128xf32, #tpu.memory_space<vmem>>, %arg2: memref<16x128xf32, #tpu.memory_space<vmem>>, %arg3: memref<128x128xf32, #tpu.memory_space<vmem>>, %arg4: memref<1x128xf32, #tpu.memory_space<vmem>>, %arg5: memref<128x128xf32, #tpu.memory_space<vmem>>, %arg6: memref<1x128xf32, #tpu.memory_space<vmem>>, %arg7: memref<1x128xf32, #tpu.memory_space<vmem>>, %arg8: memref<1x128xf32, #tpu.memory_space<vmem>>, %arg9: memref<128x128xf32, #tpu.memory_space<vmem>>, %arg10: memref<1x128xf32, #tpu.memory_space<vmem>>, %arg11: memref<16x128xf32, #tpu.memory_space<vmem>>) attributes {dimension_semantics = [#tpu.dimension_semantics<parallel>], iteration_bounds = array<i64: 1>, scalar_prefetch = 0 : i64, scratch_operands = 0 : i64, tpu.core_type = #tpu.core_type<tc>, window_params = [{transform_indices = @transform_0, window_bounds = array<i64: 16, 128>}, {transform_indices = @transform_1, window_bounds = array<i64: 16, 128>}, {pipeline_mode = #tpu.pipeline_mode<synchronous>, transform_indices = @transform_2, window_bounds = array<i64: 128, 128>}, {pipeline_mode = #tpu.pipeline_mode<synchronous>, transform_indices = @transform_3, window_bounds = array<i64: 1, 128>}, {pipeline_mode = #tpu.pipeline_mode<synchronous>, transform_indices = @transform_4, window_bounds = array<i64: 128, 128>}, {pipeline_mode = #tpu.pipeline_mode<synchronous>, transform_indices = @transform_5, window_bounds = array<i64: 1, 128>}, {pipeline_mode = #tpu.pipeline_mode<synchronous>, transform_indices = @transform_6, window_bounds = array<i64: 1, 128>}, {pipeline_mode = #tpu.pipeline_mode<synchronous>, transform_indices = @transform_7, window_bounds = array<i64: 1, 128>}, {pipeline_mode = #tpu.pipeline_mode<synchronous>, transform_indices = @transform_8, window_bounds = array<i64: 128, 128>}, {pipeline_mode = #tpu.pipeline_mode<synchronous>, transform_indices = @transform_9, window_bounds = array<i64: 1, 128>}, {transform_indices = @transform_10, window_bounds = array<i64: 16, 128>}]} {
    %c0 = arith.constant 0 : index
    %c0_0 = arith.constant 0 : index
    %0 = vector.load %arg1[%c0, %c0_0] : memref<16x128xf32, #tpu.memory_space<vmem>>, vector<16x128xf32>
    %c0_1 = arith.constant 0 : index
    %c0_2 = arith.constant 0 : index
    %1 = vector.load %arg3[%c0_1, %c0_2] : memref<128x128xf32, #tpu.memory_space<vmem>>, vector<128x128xf32>
    %cst = arith.constant dense<0.000000e+00> : vector<16x128xf32>
    %2 = tpu.matmul %0, %1, %cst {dimension_numbers = #tpu.dot_dimension_numbers<[1], [0], [0], [1], [0, 0, 1, 1], [], []>} : vector<16x128xf32>, vector<128x128xf32>, vector<16x128xf32> -> vector<16x128xf32>
    %c0_3 = arith.constant 0 : index
    %c0_4 = arith.constant 0 : index
    %3 = vector.load %arg4[%c0_3, %c0_4] : memref<1x128xf32, #tpu.memory_space<vmem>>, vector<1x128xf32>
    %4 = vector.broadcast %3 : vector<1x128xf32> to vector<16x128xf32>
    %5 = arith.addf %2, %4 : vector<16x128xf32>
    %c0_5 = arith.constant 0 : index
    %c0_6 = arith.constant 0 : index
    %6 = vector.load %arg2[%c0_5, %c0_6] : memref<16x128xf32, #tpu.memory_space<vmem>>, vector<16x128xf32>
    %c0_7 = arith.constant 0 : index
    %c0_8 = arith.constant 0 : index
    %7 = vector.load %arg5[%c0_7, %c0_8] : memref<128x128xf32, #tpu.memory_space<vmem>>, vector<128x128xf32>
    %c0_9 = arith.constant 0 : index
    %c0_10 = arith.constant 0 : index
    %8 = vector.load %arg6[%c0_9, %c0_10] : memref<1x128xf32, #tpu.memory_space<vmem>>, vector<1x128xf32>
    %c0_11 = arith.constant 0 : index
    %c0_12 = arith.constant 0 : index
    %9 = vector.load %arg7[%c0_11, %c0_12] : memref<1x128xf32, #tpu.memory_space<vmem>>, vector<1x128xf32>
    %c0_13 = arith.constant 0 : index
    %c0_14 = arith.constant 0 : index
    %10 = vector.load %arg8[%c0_13, %c0_14] : memref<1x128xf32, #tpu.memory_space<vmem>>, vector<1x128xf32>
    %cst_15 = arith.constant dense<0.000000e+00> : vector<16x128xf32>
    %11 = tpu.matmul %5, %7, %cst_15 {dimension_numbers = #tpu.dot_dimension_numbers<[1], [0], [0], [1], [0, 0, 1, 1], [], []>} : vector<16x128xf32>, vector<128x128xf32>, vector<16x128xf32> -> vector<16x128xf32>
    %12 = vector.broadcast %8 : vector<1x128xf32> to vector<16x128xf32>
    %13 = arith.addf %11, %12 : vector<16x128xf32>
    %cst_16 = arith.constant dense<0.000000e+00> : vector<16xf32>
    %14 = vector.multi_reduction <add>, %13, %cst_16 [1] : vector<16x128xf32> to vector<16xf32>
    %15 = vector.shape_cast %14 : vector<16xf32> to vector<16x1xf32>
    %16 = arith.mulf %13, %13 : vector<16x128xf32>
    %cst_17 = arith.constant dense<0.000000e+00> : vector<16xf32>
    %17 = vector.multi_reduction <add>, %16, %cst_17 [1] : vector<16x128xf32> to vector<16xf32>
    %18 = vector.shape_cast %17 : vector<16xf32> to vector<16x1xf32>
    %cst_18 = arith.constant 3.125000e-02 : f32
    %19 = vector.broadcast %cst_18 : f32 to vector<16x1xf32>
    %20 = arith.mulf %15, %19 : vector<16x1xf32>
    %cst_19 = arith.constant 3.125000e-02 : f32
    %21 = vector.broadcast %cst_19 : f32 to vector<16x1xf32>
    %22 = arith.mulf %18, %21 : vector<16x1xf32>
    %23 = arith.mulf %20, %20 : vector<16x1xf32>
    %24 = arith.subf %22, %23 : vector<16x1xf32>
    %cst_20 = arith.constant 0.000000e+00 : f32
    %25 = vector.broadcast %cst_20 : f32 to vector<16x1xf32>
    %26 = arith.maximumf %24, %25 : vector<16x1xf32>
    %27 = vector.broadcast %20 : vector<16x1xf32> to vector<16x128xf32>
    %28 = arith.subf %13, %27 : vector<16x128xf32>
    %cst_21 = arith.constant 9.99999974E-6 : f32
    %29 = vector.broadcast %cst_21 : f32 to vector<16x1xf32>
    %30 = arith.addf %26, %29 : vector<16x1xf32>
    %31 = math.rsqrt %30 : vector<16x1xf32>
    %32 = vector.broadcast %31 : vector<16x1xf32> to vector<16x128xf32>
    %33 = arith.mulf %28, %32 : vector<16x128xf32>
    %34 = vector.broadcast %9 : vector<1x128xf32> to vector<16x128xf32>
    %35 = arith.mulf %33, %34 : vector<16x128xf32>
    %36 = vector.broadcast %10 : vector<1x128xf32> to vector<16x128xf32>
    %37 = arith.addf %35, %36 : vector<16x128xf32>
    %cst_22 = arith.constant 0.000000e+00 : f32
    %38 = vector.broadcast %cst_22 : f32 to vector<16x128xf32>
    %39 = arith.maximumf %37, %38 : vector<16x128xf32>
    %40 = arith.addf %5, %39 : vector<16x128xf32>
    %41 = arith.mulf %40, %6 : vector<16x128xf32>
    %cst_23 = arith.constant dense<0.000000e+00> : vector<16x128xf32>
    %42 = tpu.matmul %41, %7, %cst_23 {dimension_numbers = #tpu.dot_dimension_numbers<[1], [0], [0], [1], [0, 0, 1, 1], [], []>} : vector<16x128xf32>, vector<128x128xf32>, vector<16x128xf32> -> vector<16x128xf32>
    %43 = vector.broadcast %8 : vector<1x128xf32> to vector<16x128xf32>
    %44 = arith.addf %42, %43 : vector<16x128xf32>
    %cst_24 = arith.constant dense<0.000000e+00> : vector<16xf32>
    %45 = vector.multi_reduction <add>, %44, %cst_24 [1] : vector<16x128xf32> to vector<16xf32>
    %46 = vector.shape_cast %45 : vector<16xf32> to vector<16x1xf32>
    %47 = arith.mulf %44, %44 : vector<16x128xf32>
    %cst_25 = arith.constant dense<0.000000e+00> : vector<16xf32>
    %48 = vector.multi_reduction <add>, %47, %cst_25 [1] : vector<16x128xf32> to vector<16xf32>
    %49 = vector.shape_cast %48 : vector<16xf32> to vector<16x1xf32>
    %cst_26 = arith.constant 3.125000e-02 : f32
    %50 = vector.broadcast %cst_26 : f32 to vector<16x1xf32>
    %51 = arith.mulf %46, %50 : vector<16x1xf32>
    %cst_27 = arith.constant 3.125000e-02 : f32
    %52 = vector.broadcast %cst_27 : f32 to vector<16x1xf32>
    %53 = arith.mulf %49, %52 : vector<16x1xf32>
    %54 = arith.mulf %51, %51 : vector<16x1xf32>
    %55 = arith.subf %53, %54 : vector<16x1xf32>
    %cst_28 = arith.constant 0.000000e+00 : f32
    %56 = vector.broadcast %cst_28 : f32 to vector<16x1xf32>
    %57 = arith.maximumf %55, %56 : vector<16x1xf32>
    %58 = vector.broadcast %51 : vector<16x1xf32> to vector<16x128xf32>
    %59 = arith.subf %44, %58 : vector<16x128xf32>
    %cst_29 = arith.constant 9.99999974E-6 : f32
    %60 = vector.broadcast %cst_29 : f32 to vector<16x1xf32>
    %61 = arith.addf %57, %60 : vector<16x1xf32>
    %62 = math.rsqrt %61 : vector<16x1xf32>
    %63 = vector.broadcast %62 : vector<16x1xf32> to vector<16x128xf32>
    %64 = arith.mulf %59, %63 : vector<16x128xf32>
    %65 = vector.broadcast %9 : vector<1x128xf32> to vector<16x128xf32>
    %66 = arith.mulf %64, %65 : vector<16x128xf32>
    %67 = vector.broadcast %10 : vector<1x128xf32> to vector<16x128xf32>
    %68 = arith.addf %66, %67 : vector<16x128xf32>
    %cst_30 = arith.constant 0.000000e+00 : f32
    %69 = vector.broadcast %cst_30 : f32 to vector<16x128xf32>
    %70 = arith.maximumf %68, %69 : vector<16x128xf32>
    %71 = arith.addf %41, %70 : vector<16x128xf32>
    %72 = arith.mulf %71, %6 : vector<16x128xf32>
    %c0_31 = arith.constant 0 : index
    %c0_32 = arith.constant 0 : index
    %73 = vector.load %arg9[%c0_31, %c0_32] : memref<128x128xf32, #tpu.memory_space<vmem>>, vector<128x128xf32>
    %cst_33 = arith.constant dense<0.000000e+00> : vector<16x128xf32>
    %74 = tpu.matmul %72, %73, %cst_33 {dimension_numbers = #tpu.dot_dimension_numbers<[1], [0], [0], [1], [0, 0, 1, 1], [], []>} : vector<16x128xf32>, vector<128x128xf32>, vector<16x128xf32> -> vector<16x128xf32>
    %c0_34 = arith.constant 0 : index
    %c0_35 = arith.constant 0 : index
    %75 = vector.load %arg10[%c0_34, %c0_35] : memref<1x128xf32, #tpu.memory_space<vmem>>, vector<1x128xf32>
    %76 = vector.broadcast %75 : vector<1x128xf32> to vector<16x128xf32>
    %77 = arith.addf %74, %76 : vector<16x128xf32>
    %c0_36 = arith.constant 0 : index
    %c0_37 = arith.constant 0 : index
    %78 = vector.load %arg11[%c0_36, %c0_37] : memref<16x128xf32, #tpu.memory_space<vmem>>, vector<16x128xf32>
    tpu.vector_store %arg11[%c0_36, %c0_37], %77 {strides = array<i32>} : memref<16x128xf32, #tpu.memory_space<vmem>>, vector<16x128xf32>,
    return
  }
  func.func @transform_0(%arg0: i32) -> (i32, i32) {
    %c0_i32 = arith.constant 0 : i32
    %c0_i32_0 = arith.constant 0 : i32
    return %arg0, %c0_i32 : i32, i32
  }
  func.func @transform_1(%arg0: i32) -> (i32, i32) {
    %c0_i32 = arith.constant 0 : i32
    %c0_i32_0 = arith.constant 0 : i32
    return %arg0, %c0_i32 : i32, i32
  }
  func.func @transform_2(%arg0: i32) -> (i32, i32) {
    %c0_i32 = arith.constant 0 : i32
    %c0_i32_0 = arith.constant 0 : i32
    %c0_i32_1 = arith.constant 0 : i32
    return %c0_i32, %c0_i32_0 : i32, i32
  }
  func.func @transform_3(%arg0: i32) -> (i32, i32) {
    %c0_i32 = arith.constant 0 : i32
    %c0_i32_0 = arith.constant 0 : i32
    %c0_i32_1 = arith.constant 0 : i32
    return %c0_i32, %c0_i32_0 : i32, i32
  }
  func.func @transform_4(%arg0: i32) -> (i32, i32) {
    %c0_i32 = arith.constant 0 : i32
    %c0_i32_0 = arith.constant 0 : i32
    %c0_i32_1 = arith.constant 0 : i32
    return %c0_i32, %c0_i32_0 : i32, i32
  }
  func.func @transform_5(%arg0: i32) -> (i32, i32) {
    %c0_i32 = arith.constant 0 : i32
    %c0_i32_0 = arith.constant 0 : i32
    %c0_i32_1 = arith.constant 0 : i32
    return %c0_i32, %c0_i32_0 : i32, i32
  }
  func.func @transform_6(%arg0: i32) -> (i32, i32) {
    %c0_i32 = arith.constant 0 : i32
    %c0_i32_0 = arith.constant 0 : i32
    %c0_i32_1 = arith.constant 0 : i32
    return %c0_i32, %c0_i32_0 : i32, i32
  }
  func.func @transform_7(%arg0: i32) -> (i32, i32) {
    %c0_i32 = arith.constant 0 : i32
    %c0_i32_0 = arith.constant 0 : i32
    %c0_i32_1 = arith.constant 0 : i32
    return %c0_i32, %c0_i32_0 : i32, i32
  }
  func.func @transform_8(%arg0: i32) -> (i32, i32) {
    %c0_i32 = arith.constant 0 : i32
    %c0_i32_0 = arith.constant 0 : i32
    %c0_i32_1 = arith.constant 0 : i32
    return %c0_i32, %c0_i32_0 : i32, i32
  }
  func.func @transform_9(%arg0: i32) -> (i32, i32) {
    %c0_i32 = arith.constant 0 : i32
    %c0_i32_0 = arith.constant 0 : i32
    %c0_i32_1 = arith.constant 0 : i32
    return %c0_i32, %c0_i32_0 : i32, i32
  }
  func.func @transform_10(%arg0: i32) -> (i32, i32) {
    %c0_i32 = arith.constant 0 : i32
    %c0_i32_0 = arith.constant 0 : i32
    return %arg0, %c0_i32 : i32, i32
  }
}

</mosaic_0001>

<bundles_post_ra>
// kernel: tpu_custom_call.1
= control target key start
LH: loop header
LB: loop body
LE: loop exit
PB: predicated region body
PF: predicated region fallthrough
CT: control target
= control target key end

     0   :  { %15 = vsyncpa [#allocation3], 0  ;;  %s1311_s0 = inlined_call_operand.hbm [shape: f32[16,128], index: 0, kind: input, shape index: {}]   ;;  %s1312_s1 = inlined_call_operand.hbm [shape: f32[16,128], index: 1, kind: input, shape index: {}]   ;;  %s1313_s2 = inlined_call_operand.hbm [shape: f32[128,128], index: 2, kind: input, shape index: {}]   ;;  %s1314_s3 = inlined_call_operand.vmem [shape: f32[1,128], index: 3, kind: input, shape index: {}]   ;;  %s1315_s4 = inlined_call_operand.hbm [shape: f32[128,128], index: 4, kind: input, shape index: {}]   ;;  %s1316_s5 = inlined_call_operand.vmem [shape: f32[1,128], index: 5, kind: input, shape index: {}]   ;;  %s1317_s6 = inlined_call_operand.vmem [shape: f32[1,128], index: 6, kind: input, shape index: {}]   ;;  %s1318_s7 = inlined_call_operand.vmem [shape: f32[1,128], index: 7, kind: input, shape index: {}]   ;;  %s1319_s8 = inlined_call_operand.hbm [shape: f32[128,128], index: 8, kind: input, shape index: {}]   ;;  %s1320_s9 = inlined_call_operand.vmem [shape: f32[1,128], index: 9, kind: input, shape index: {}]   ;;  %s1321_s10 = inlined_call_operand.hbm [shape: f32[16,128], index: 10, kind: output, shape index: {}]  }
   0x1   :  { %16 = vsyncpa [#allocation6], 0 }
   0x2   :  { %17 = vsyncpa [#allocation9], 0 }
   0x3   :  { %18 = vsyncpa [#allocation4], 0  ;;  %s1089_s13 = smov [#allocation5]   ;;  %s1090_s15 = smov [#allocation8]  }
   0x4   :  { %s36_s14 = sshll.u32 %s1089_s13, 4  ;;  %s62_s16 = sshll.u32 %s1090_s15, 4  ;;  %s37_s14 = int_to_ptr.vmem [resolvable:$true] %s36_s14  ;;  %s1152_s16 = int_to_ptr.vmem [resolvable:$true] %s62_s16 }
   0x5   :  { %s949_s19 = scalar_lea.hbm %s1312_s1, 256 }
   0x6   :  { %p950_p0 = scmp.ne.s32.totalorder %s1312_s1, %s949_s19  ;;  %p953_p1 = scmp.lt.u32.totalorder %s949_s19, %s1312_s1 }
   0x8   :  { %p955_p2 = pnand %p953_p1, %p950_p0 }
   0xa   :  { %958 = shalt.err (!%p955_p2)
}
   0xb   :  { %s959_s24 = scalar_lea.vmem %s37_s14, 256  ;;  %p964_p4 = scmp.lt.s32.totalorder %s37_s14, %s37_s14 }
   0xc   :  { %p960_p3 = scmp.ne.s32.totalorder %s37_s14, %s959_s24  ;;  %p965_p5 = scmp.lt.s32.totalorder %s959_s24, %s959_s24 }
   0xe   :  { %p966_p6 = por %p965_p5, %p964_p4 }
  0x10   :  { %p967_p7 = pnand %p966_p6, %p960_p3 }
  0x12   :  { %970 = shalt.err (!%p967_p7)
}
  0x13   :  { %s1091_s25 = smov 128   ;;  %s1092_s26 = smov 8  }
  0x14   :  { %42 = dma.hbm_to_vmem [thread:$0]  %s1312_s1, 256, %s37_s14, [#allocation6], %s1091_s25, %s1091_s25, %s1092_s26  }
  0x15   :  { %s971_s11 = scalar_lea.hbm %s1315_s4, 2048 }
  0x16   :  { %p972_p8 = scmp.ne.s32.totalorder %s1315_s4, %s971_s11  ;;  %p975_p9 = scmp.lt.u32.totalorder %s971_s11, %s1315_s4 }
  0x18   :  { %p977_p10 = pnand %p975_p9, %p972_p8 }
  0x1a   :  { %980 = shalt.err (!%p977_p10)
}
  0x1b   :  { %s981_s18 = scalar_lea.vmem %s1152_s16, 2048  ;;  %p986_p12 = scmp.lt.s32.totalorder %s1152_s16, %s1152_s16 }
  0x1c   :  { %p982_p11 = scmp.ne.s32.totalorder %s1152_s16, %s981_s18  ;;  %p987_p13 = scmp.lt.s32.totalorder %s981_s18, %s981_s18 }
  0x1e   :  { %p988_p0 = por %p987_p13, %p986_p12 }
  0x20   :  { %p989_p1 = pnand %p988_p0, %p982_p11 }
  0x22   :  { %992 = shalt.err (!%p989_p1)
}
  0x23   :  { %68 = dma.hbm_to_vmem [thread:$0]  %s1315_s4, 2048, %s1152_s16, [#allocation9], %s1091_s25, %s1091_s25, %s1092_s26  }
  0x24   :  { %s1093_s19 = smov [#allocation2]   ;;  %s1094_s21 = smov [#allocation7]  }
  0x25   :  { %s24_s20 = sshll.u32 %s1093_s19, 4  ;;  %s48_s22 = sshll.u32 %s1094_s21, 4  ;;  %s25_s20 = int_to_ptr.vmem [resolvable:$true] %s24_s20  ;;  %s1189_s22 = int_to_ptr.vmem [resolvable:$true] %s48_s22 }
  0x26   :  { %s993_s27 = scalar_lea.hbm %s1311_s0, 256 }
  0x27   :  { %p994_p2 = scmp.ne.s32.totalorder %s1311_s0, %s993_s27  ;;  %p997_p3 = scmp.lt.u32.totalorder %s993_s27, %s1311_s0 }
  0x29   :  { %p999_p4 = pnand %p997_p3, %p994_p2 }
  0x2b   :  { %1002 = shalt.err (!%p999_p4)
}
  0x2c   :  { %s1003_s4 = scalar_lea.vmem %s25_s20, 256  ;;  %p1008_p6 = scmp.lt.s32.totalorder %s25_s20, %s25_s20 }
  0x2d   :  { %p1004_p5 = scmp.ne.s32.totalorder %s25_s20, %s1003_s4  ;;  %p1009_p7 = scmp.lt.s32.totalorder %s1003_s4, %s1003_s4 }
  0x2f   :  { %p1010_p8 = por %p1009_p7, %p1008_p6 }
  0x31   :  { %p1011_p9 = pnand %p1010_p8, %p1004_p5 }
  0x33   :  { %1014 = shalt.err (!%p1011_p9)
}
  0x34   :  { %30 = dma.hbm_to_vmem [thread:$0]  %s1311_s0, 256, %s25_s20, [#allocation3], %s1091_s25, %s1091_s25, %s1092_s26  }
  0x35   :  { %s1015_s17 = scalar_lea.hbm %s1313_s2, 2048 }
  0x36   :  { %p1016_p10 = scmp.ne.s32.totalorder %s1313_s2, %s1015_s17  ;;  %p1019_p11 = scmp.lt.u32.totalorder %s1015_s17, %s1313_s2 }
  0x38   :  { %p1021_p12 = pnand %p1019_p11, %p1016_p10 }
  0x3a   :  { %1024 = shalt.err (!%p1021_p12)
}
  0x3b   :  { %s1025_s21 = scalar_lea.vmem %s1189_s22, 2048  ;;  %p1030_p0 = scmp.lt.s32.totalorder %s1189_s22, %s1189_s22 }
  0x3c   :  { %p1026_p13 = scmp.ne.s32.totalorder %s1189_s22, %s1025_s21  ;;  %p1031_p1 = scmp.lt.s32.totalorder %s1025_s21, %s1025_s21 }
  0x3e   :  { %p1032_p2 = por %p1031_p1, %p1030_p0 }
  0x40   :  { %p1033_p3 = pnand %p1032_p2, %p1026_p13 }
  0x42   :  { %1036 = shalt.err (!%p1033_p3)
}
  0x43   :  { %54 = dma.hbm_to_vmem [thread:$0]  %s1313_s2, 2048, %s1189_s22, [#allocation6], %s1091_s25, %s1091_s25, %s1092_s26  }
  0x44   :  { %s1095_s23 = smov [#allocation10]   ;;  %s1037_s29 = scalar_lea.hbm %s1319_s8, 2048 }
  0x45   :  { %s80_s24 = sshll.u32 %s1095_s23, 4  ;;  %p1038_p4 = scmp.ne.s32.totalorder %s1319_s8, %s1037_s29  ;;  %s81_s24 = int_to_ptr.vmem [resolvable:$true] %s80_s24 }
  0x46   :  { %p1041_p5 = scmp.lt.u32.totalorder %s1037_s29, %s1319_s8 }
  0x48   :  { %p1043_p6 = pnand %p1041_p5, %p1038_p4 }
  0x4a   :  { %1046 = shalt.err (!%p1043_p6)
}
  0x4b   :  { %s1047_s12 = scalar_lea.vmem %s81_s24, 2048  ;;  %p1052_p8 = scmp.lt.s32.totalorder %s81_s24, %s81_s24 }
  0x4c   :  { %p1048_p7 = scmp.ne.s32.totalorder %s81_s24, %s1047_s12  ;;  %p1053_p9 = scmp.lt.s32.totalorder %s1047_s12, %s1047_s12 }
  0x4e   :  { %p1054_p10 = por %p1053_p9, %p1052_p8 }
  0x50   :  { %p1055_p11 = pnand %p1054_p10, %p1048_p7 }
  0x52   :  { %1058 = shalt.err (!%p1055_p11)
}
  0x53   :  { %86 = dma.hbm_to_vmem [thread:$0]  %s1319_s8, 2048, %s81_s24, [#allocation9], %s1091_s25, %s1091_s25, %s1092_s26  }
  0x54   :  { %1081 = dma.done.wait [#allocation3], 256  }
  0x55   :  { %1082 = vsyncadd [#allocation3], 4294967040 }
  0x56   :  { %1083 = dma.done.wait [#allocation6], 2304  }
  0x57   :  { %1084 = vsyncadd [#allocation6], 4294964992 }
  0x58   :  { %1085 = dma.done.wait [#allocation9], 4096  }
  0x59   :  { %1086 = vsyncadd [#allocation9], 4294963200  ;;  %v106_v0 = vld [vmem:[#allocation7] sm:$0xff]  ;;  %v107_v1 = vld [vmem:[#allocation7 + $0x8] sm:$0xff]  ;;  %s1096_s14 = smov [#allocation11]  }
  0x5a   :  { %v108_v2 = vld [vmem:[#allocation7 + $0x10] sm:$0xff]  ;;  %v805_v3 = vpack.c.bf16 %v107_v1, %v106_v0  ;;  %v109_v4 = vld [vmem:[#allocation7 + $0x18] sm:$0xff]  ;;  %v110_v6 = vld [vmem:[#allocation7 + $0x20] sm:$0xff]  ;;  %s574_s19 = sshll.u32 %s1096_s14, 4  ;;  %s575_s19 = int_to_ptr.vmem [resolvable:$true] %s574_s19 }
  0x5b   :  { %v809_v5 = vpack.c.bf16 %v109_v4, %v108_v2  ;;  %v111_v7 = vld [vmem:[#allocation7 + $0x28] sm:$0xff]  ;;  %v112_v9 = vld [vmem:[#allocation7 + $0x30] sm:$0xff]  ;;  %v113_v10 = vld [vmem:[#allocation7 + $0x38] sm:$0xff]  ;;  %s1059_s21 = scalar_lea.vmem %s575_s19, 256  ;;  %p1064_p13 = scmp.lt.s32.totalorder %s575_s19, %s575_s19 }
  0x5c   :  { %806 = vmatprep.subr.bf16.mxu0 %v805_v3  ;;  %v813_v8 = vpack.c.bf16 %v111_v7, %v110_v6  ;;  %v104_v11 = vld [vmem:[#allocation2] sm:$0xff]  ;;  %v207_v13 = vld [vmem:[#allocation8 + $0x8] sm:$0xff]  ;;  %v208_v14 = vld [vmem:[#allocation8 + $0x10] sm:$0xff]  ;;  %v817_v20 = vpack.c.bf16 %v113_v10, %v112_v9  ;;  %p1060_p12 = scmp.ne.s32.totalorder %s575_s19, %s1059_s21  ;;  %p1065_p0 = scmp.lt.s32.totalorder %s1059_s21, %s1059_s21 }
  0x5d   :  { %808 = vmatpush3.bf16.msra.mxu0 %v805_v3  ;;  %697 = vmatprep.mubr.f32.mxu0 %v104_v11  ;;  %v206_v12 = vld [vmem:[#allocation8] sm:$0xff]  ;;  %v209_v16 = vld [vmem:[#allocation8 + $0x18] sm:$0xff]  ;;  %v211_v19 = vld [vmem:[#allocation8 + $0x28] sm:$0xff] }
  0x5e   :  { %810 = vmatprep.subr.bf16.mxu0 %v809_v5  ;;  %v837_v15 = vpack.c.bf16 %v207_v13, %v206_v12  ;;  %v841_v17 = vpack.c.bf16 %v209_v16, %v208_v14  ;;  %v210_v18 = vld [vmem:[#allocation8 + $0x20] sm:$0xff]  ;;  %v115_v22 = vld [vmem:[#allocation7 + $0x48] sm:$0xff]  ;;  %v212_v24 = vld [vmem:[#allocation8 + $0x30] sm:$0xff]  ;;  %p1066_p1 = por %p1065_p0, %p1064_p13 }
  0x5f   :  { %v114_v21 = vld [vmem:[#allocation7 + $0x40] sm:$0xff]  ;;  %v845_v23 = vpack.c.bf16 %v211_v19, %v210_v18  ;;  %v213_v25 = vld [vmem:[#allocation8 + $0x38] sm:$0xff]  ;;  %v116_v27 = vld [vmem:[#allocation7 + $0x50] sm:$0xff] }
  0x60   :  { %838 = vmatprep.subr.bf16.mxu1 %v837_v15  ;;  %v821_v26 = vpack.c.bf16 %v115_v22, %v114_v21  ;;  %v117_v28 = vld [vmem:[#allocation7 + $0x58] sm:$0xff]  ;;  %v849_v29 = vpack.c.bf16 %v213_v25, %v212_v24  ;;  %v214_v30 = vld [vmem:[#allocation8 + $0x40] sm:$0xff]  ;;  %v215_v31 = vld [vmem:[#allocation8 + $0x48] sm:$0xff]  ;;  %p1067_p2 = pnand %p1066_p1, %p1060_p12 }
  0x61   :  { %812 = vmatpush3.bf16.msra.mxu0 %v809_v5  ;;  %840 = vmatpush3.bf16.msra.mxu1 %v837_v15  ;;  %v825_v32 = vpack.c.bf16 %v117_v28, %v116_v27  ;;  %v118_v33 = vld [vmem:[#allocation7 + $0x60] sm:$0xff]  ;;  %v119_v34 = vld [vmem:[#allocation7 + $0x68] sm:$0xff]  ;;  %v853_v35 = vpack.c.bf16 %v215_v31, %v214_v30  ;;  %v216_v36 = vld [vmem:[#allocation8 + $0x50] sm:$0xff] }
  0x62   :  { %814 = vmatprep.subr.bf16.mxu0 %v813_v8  ;;  %842 = vmatprep.subr.bf16.mxu1 %v841_v17  ;;  %v217_v37 = vld [vmem:[#allocation8 + $0x58] sm:$0xff]  ;;  %v829_v38 = vpack.c.bf16 %v119_v34, %v118_v33  ;;  %v120_v39 = vld [vmem:[#allocation7 + $0x70] sm:$0xff]  ;;  %v218_v42 = vld [vmem:[#allocation8 + $0x60] sm:$0xff] }
  0x63   :  { %v121_v40 = vld [vmem:[#allocation7 + $0x78] sm:$0xff]  ;;  %v857_v41 = vpack.c.bf16 %v217_v37, %v216_v36  ;;  %v219_v43 = vld [vmem:[#allocation8 + $0x68] sm:$0xff]  ;;  %v220_v47 = vld [vmem:[#allocation8 + $0x70] sm:$0xff] }
  0x64   :  { %v833_v44 = vpack.c.bf16 %v121_v40, %v120_v39  ;;  %v861_v45 = vpack.c.bf16 %v219_v43, %v218_v42  ;;  %v105_v46 = vld [vmem:[#allocation2 + $0x8] sm:$0xff]  ;;  %v221_v48 = vld [vmem:[#allocation8 + $0x78] sm:$0xff]  ;;  %v588_v50 = vld [vmem:[%s1314_s3] ss:$0 sm:$0xff] }
  0x65   :  { %816 = vmatpush3.bf16.msra.mxu0 %v813_v8  ;;  %844 = vmatpush3.bf16.msra.mxu1 %v841_v17  ;;  %v865_v49 = vpack.c.bf16 %v221_v48, %v220_v47  ;;  %v589_v55 = vld [vmem:[%s1316_s5] ss:$0 sm:$0xff]  ;;  %v1266_v31 = vld [vmem:[#allocation5 + $0x8] sm:$0xff]  ;;  %v471_v43 = vld [vmem:[#allocation10 + $0x10] sm:$0xff] }
  0x66   :  { %818 = vmatprep.subr.bf16.mxu0 %v817_v20  ;;  %846 = vmatprep.subr.bf16.mxu1 %v845_v23  ;;  %v1250_v16 = vld [vmem:[%s1317_s6] ss:$0 sm:$0xff]  ;;  %v474_v47 = vld [vmem:[#allocation10 + $0x28] sm:$0xff] }
  0x67   :  { %v1255_v18 = vld [vmem:[%s1318_s7] ss:$0 sm:$0xff] }
  0x68   :  { %v469_v40 = vld [vmem:[#allocation10] sm:$0xff] }
  0x69   :  { %820 = vmatpush3.bf16.msra.mxu0 %v817_v20  ;;  %848 = vmatpush3.bf16.msra.mxu1 %v845_v23 }
  0x6a   :  { %822 = vmatprep.subr.bf16.mxu0 %v821_v26  ;;  %850 = vmatprep.subr.bf16.mxu1 %v849_v29 }
  0x6d   :  { %824 = vmatpush3.bf16.msra.mxu0 %v821_v26  ;;  %852 = vmatpush3.bf16.msra.mxu1 %v849_v29  ;;  %v1260_v26 = vld [vmem:[#allocation5] sm:$0xff] }
  0x6e   :  { %826 = vmatprep.subr.bf16.mxu0 %v825_v32  ;;  %854 = vmatprep.subr.bf16.mxu1 %v853_v35 }
  0x71   :  { %828 = vmatpush3.bf16.msra.mxu0 %v825_v32  ;;  %856 = vmatpush3.bf16.msra.mxu1 %v853_v35 }
  0x72   :  { %830 = vmatprep.subr.bf16.mxu0 %v829_v38  ;;  %858 = vmatprep.subr.bf16.mxu1 %v857_v41 }
  0x75   :  { %832 = vmatpush3.bf16.msra.mxu0 %v829_v38  ;;  %860 = vmatpush3.bf16.msra.mxu1 %v857_v41 }
  0x76   :  { %834 = vmatprep.subr.bf16.mxu0 %v833_v44  ;;  %862 = vmatprep.subr.bf16.mxu1 %v861_v45 }
  0x79   :  { %836 = vmatpush3.bf16.msra.mxu0 %v833_v44  ;;  %864 = vmatpush3.bf16.msra.mxu1 %v861_v45  ;;  %v472_v44 = vld [vmem:[#allocation10 + $0x18] sm:$0xff] }
  0x7a   :  { %870 = vmatprep.subr.bf16.mxu0 %v837_v15  ;;  %866 = vmatprep.subr.bf16.mxu1 %v865_v49 }
  0x7c   :  { %698 = vmatmul.mubr.f32.vlgmr.msra.gmra.mrb[0].mxu0 %v105_v46  ;;  %v473_v46 = vld [vmem:[#allocation10 + $0x20] sm:$0xff] }
  0x7d   :  { %872 = vmatpush3.bf16.msra.mxu0 %v837_v15  ;;  %868 = vmatpush3.bf16.msra.mxu1 %v865_v49  ;;  %v909_v48 = vpack.c.bf16 %v474_v47, %v473_v46 }
  0x7e   :  { %874 = vmatprep.subr.bf16.mxu0 %v841_v17 }
  0x81   :  { %876 = vmatpush3.bf16.msra.mxu0 %v841_v17 }
  0x82   :  { %878 = vmatprep.subr.bf16.mxu0 %v845_v23 }
  0x85   :  { %880 = vmatpush3.bf16.msra.mxu0 %v845_v23 }
  0x86   :  { %882 = vmatprep.subr.bf16.mxu0 %v849_v29 }
  0x89   :  { %884 = vmatpush3.bf16.msra.mxu0 %v849_v29 }
  0x8a   :  { %886 = vmatprep.subr.bf16.mxu0 %v853_v35 }
  0x8d   :  { %888 = vmatpush3.bf16.msra.mxu0 %v853_v35 }
  0x8e   :  { %890 = vmatprep.subr.bf16.mxu0 %v857_v41 }
  0x91   :  { %892 = vmatpush3.bf16.msra.mxu0 %v857_v41  ;;  %v470_v41 = vld [vmem:[#allocation10 + $0x8] sm:$0xff] }
  0x92   :  { %894 = vmatprep.subr.bf16.mxu0 %v861_v45  ;;  %v901_v42 = vpack.c.bf16 %v470_v41, %v469_v40 }
  0x94   :  { %902 = vmatprep.subr.bf16.mxu1 %v901_v42 }
  0x95   :  { %896 = vmatpush3.bf16.msra.mxu0 %v861_v45  ;;  %v905_v45 = vpack.c.bf16 %v472_v44, %v471_v43 }
  0x96   :  { %898 = vmatprep.subr.bf16.mxu0 %v865_v49 }
  0x99   :  { %900 = vmatpush3.bf16.msra.mxu0 %v865_v49  ;;  %v475_v49 = vld [vmem:[#allocation10 + $0x30] sm:$0xff] }
 0x14f   :  { %v699_v51 = vpop.f32.mrb[0].mxu0 }
 0x150   :  { %v195_v52 = vpop.f32.mrb[1].mxu0  ;;  %v201_v54 = vadd.f32 %v699_v51, %v588_v50 }
 0x151   :  { %v196_v53 = vadd.f32 %v588_v50, %v195_v52  ;;  %v476_v50 = vld [vmem:[#allocation10 + $0x38] sm:$0xff]  ;;  %v477_v52 = vld [vmem:[#allocation10 + $0x40] sm:$0xff] }
 0x152   :  { %v913_v51 = vpack.c.bf16 %v476_v50, %v475_v49 }
 0x153   :  { %732 = vmatprep.mubr.f32.mxu1 %v196_v53 }
 0x154   :  { %733 = vmatmul.mubr.f32.vlgmr.msra.gmra.mrb[0].mxu1 %v201_v54 }
 0x155   :  { %904 = vmatpush3.bf16.msra.mxu1 %v901_v42 }
 0x156   :  { %906 = vmatprep.subr.bf16.mxu1 %v905_v45 }
 0x159   :  { %908 = vmatpush3.bf16.msra.mxu1 %v905_v45 }
 0x15a   :  { %910 = vmatprep.subr.bf16.mxu1 %v909_v48 }
 0x15d   :  { %912 = vmatpush3.bf16.msra.mxu1 %v909_v48 }
 0x15e   :  { %914 = vmatprep.subr.bf16.mxu1 %v913_v51 }
 0x161   :  { %916 = vmatpush3.bf16.msra.mxu1 %v913_v51 }
 0x227   :  { %v734_v56 = vpop.f32.mrb[0].mxu1 }
 0x228   :  { %v297_v57 = vpop.f32.mrb[1].mxu1  ;;  %v303_v59 = vadd.f32 %v734_v56, %v589_v55  ;;  %v480_v56 = vld [vmem:[#allocation10 + $0x58] sm:$0xff] }
 0x229   :  { %v298_v58 = vadd.f32 %v589_v55, %v297_v57 }
 0x22a   :  { %v311_v61 = vmul.f32 %v303_v59, %v303_v59 }
 0x22b   :  { %306 = vadd.xlane.f32.xlu0 %v298_v58  ;;  %v310_v60 = vmul.f32 %v298_v58, %v298_v58 }
 0x22d   :  { %312 = vadd.xlane.f32.xlu1 %v310_v60 }
 0x22f   :  { %308 = vadd.xlane.f32.xlu0 %v303_v59 }
 0x231   :  { %314 = vadd.xlane.f32.xlu1 %v311_v61  ;;  %v483_v61 = vld [vmem:[#allocation10 + $0x70] sm:$0xff] }
 0x2b8   :  { %v307_v62 = vpop.xlane.xlu0 %306 }
 0x2b9   :  { %v316_v63 = vmul.f32 0.03125, %v307_v62  ;;  %v484_v62 = vld [vmem:[#allocation10 + $0x78] sm:$0xff] }
 0x2ba   :  { %v313_v0 = vpop.xlane.xlu1 %312 }
 0x2bb   :  { %v320_v1 = vmul.f32 %v316_v63, %v316_v63  ;;  %v318_v2 = vmul.f32 0.03125, %v313_v0  ;;  %v326_v14 = vsub.f32 %v298_v58, %v316_v63  ;;  %v481_v58 = vld [vmem:[#allocation10 + $0x60] sm:$0xff]  ;;  %v929_v63 = vpack.c.bf16 %v484_v62, %v483_v61 }
 0x2bc   :  { %v309_v3 = vpop.xlane.xlu0 %308 }
 0x2bd   :  { %v322_v4 = vsub.f32 %v318_v2, %v320_v1  ;;  %v317_v5 = vmul.f32 0.03125, %v309_v3 }
 0x2be   :  { %v315_v6 = vpop.xlane.xlu1 %314 }
 0x2bf   :  { %v324_v7 = vmax.f32 %v322_v4, 0.0  ;;  %v321_v8 = vmul.f32 %v317_v5, %v317_v5  ;;  %v319_v9 = vmul.f32 0.03125, %v315_v6  ;;  %v327_v19 = vsub.f32 %v303_v59, %v317_v5  ;;  %v482_v59 = vld [vmem:[#allocation10 + $0x68] sm:$0xff] }
 0x2c0   :  { %v925_v60 = vpack.c.bf16 %v482_v59, %v481_v58 }
 0x2c1   :  { %v328_v10 = vadd.f32 1e-05, %v324_v7  ;;  %v323_v11 = vsub.f32 %v319_v9, %v321_v8 }
 0x2c3   :  { %941 = vrsqrt.f32 %v328_v10  ;;  %v325_v12 = vmax.f32 %v323_v11, 0.0 }
 0x2c5   :  { %v329_v13 = vadd.f32 1e-05, %v325_v12 }
 0x2c7   :  { %943 = vrsqrt.f32 %v329_v13 }
 0x2cd   :  { %v942_v15 = vpop.eup %941 }
 0x2ce   :  { %v332_v17 = vmul.f32 %v942_v15, %v326_v14 }
 0x2d0   :  { %v340_v20 = vmul.f32 %v1250_v16, %v332_v17 }
 0x2d1   :  { %v944_v21 = vpop.eup %943 }
 0x2d2   :  { %v333_v22 = vmul.f32 %v944_v21, %v327_v19  ;;  %v348_v23 = vadd.f32 %v1255_v18, %v340_v20 }
 0x2d4   :  { %v350_v24 = vmax.f32 %v348_v23, 0.0  ;;  %v341_v25 = vmul.f32 %v1250_v16, %v333_v22 }
 0x2d6   :  { %v352_v27 = vadd.f32 %v350_v24, %v196_v53  ;;  %v349_v28 = vadd.f32 %v1255_v18, %v341_v25  ;;  %v478_v53 = vld [vmem:[#allocation10 + $0x48] sm:$0xff] }
 0x2d8   :  { %v1264_v29 = vmul.f32 %v352_v27, %v1260_v26  ;;  %v351_v30 = vmax.f32 %v349_v28, 0.0 }
 0x2da   :  { %767 = vmatprep.mubr.f32.mxu0 %v1264_v29  ;;  %v353_v32 = vadd.f32 %v351_v30, %v201_v54  ;;  %v917_v54 = vpack.c.bf16 %v478_v53, %v477_v52 }
 0x2dc   :  { %v1270_v33 = vmul.f32 %v353_v32, %v1266_v31  ;;  %918 = vmatprep.subr.bf16.mxu1 %v917_v54 }
 0x2dd   :  { %920 = vmatpush3.bf16.msra.mxu1 %v917_v54 }
 0x2de   :  { %768 = vmatmul.mubr.f32.vlgmr.msra.gmra.mrb[2].mxu0 %v1270_v33 }
 0x3b1   :  { %v769_v34 = vpop.f32.mrb[2].mxu0 }
 0x3b2   :  { %v1273_v35 = vadd.f32 %v769_v34, %v589_v55  ;;  %v422_v36 = vpop.f32.mrb[3].mxu0 }
 0x3b3   :  { %v1275_v37 = vadd.f32 %v589_v55, %v422_v36  ;;  %v479_v55 = vld [vmem:[#allocation10 + $0x50] sm:$0xff] }
 0x3b4   :  { %433 = vadd.xlane.f32.xlu1 %v1273_v35  ;;  %v436_v38 = vmul.f32 %v1273_v35, %v1273_v35  ;;  %v921_v57 = vpack.c.bf16 %v480_v56, %v479_v55 }
 0x3b5   :  { %431 = vadd.xlane.f32.xlu0 %v1275_v37  ;;  %v435_v39 = vmul.f32 %v1275_v37, %v1275_v37 }
 0x3b6   :  { %922 = vmatprep.subr.bf16.mxu1 %v921_v57 }
 0x3b7   :  { %924 = vmatpush3.bf16.msra.mxu1 %v921_v57 }
 0x3b8   :  { %439 = vadd.xlane.f32.xlu1 %v436_v38  ;;  %926 = vmatprep.subr.bf16.mxu1 %v925_v60 }
 0x3b9   :  { %437 = vadd.xlane.f32.xlu0 %v435_v39 }
 0x3bb   :  { %928 = vmatpush3.bf16.msra.mxu1 %v925_v60 }
 0x3bc   :  { %930 = vmatprep.subr.bf16.mxu1 %v929_v63 }
 0x3bf   :  { %932 = vmatpush3.bf16.msra.mxu1 %v929_v63 }
 0x441   :  { %v434_v0 = vpop.xlane.xlu1 %433 }
 0x442   :  { %v442_v1 = vmul.f32 0.03125, %v434_v0  ;;  %v432_v2 = vpop.xlane.xlu0 %431 }
 0x443   :  { %v441_v3 = vmul.f32 0.03125, %v432_v2 }
 0x444   :  { %v446_v5 = vmul.f32 %v442_v1, %v442_v1  ;;  %v452_v17 = vsub.f32 %v1273_v35, %v442_v1 }
 0x445   :  { %v440_v4 = vpop.xlane.xlu1 %439  ;;  %v445_v8 = vmul.f32 %v441_v3, %v441_v3  ;;  %v451_v20 = vsub.f32 %v1275_v37, %v441_v3 }
 0x446   :  { %v444_v6 = vmul.f32 0.03125, %v440_v4  ;;  %v438_v7 = vpop.xlane.xlu0 %437 }
 0x447   :  { %v443_v9 = vmul.f32 0.03125, %v438_v7 }
 0x448   :  { %v448_v10 = vsub.f32 %v444_v6, %v446_v5 }
 0x449   :  { %v447_v11 = vsub.f32 %v443_v9, %v445_v8 }
 0x44a   :  { %v450_v12 = vmax.f32 %v448_v10, 0.0 }
 0x44b   :  { %v449_v13 = vmax.f32 %v447_v11, 0.0 }
 0x44c   :  { %v454_v14 = vadd.f32 1e-05, %v450_v12 }
 0x44d   :  { %v453_v15 = vadd.f32 1e-05, %v449_v13 }
 0x44e   :  { %945 = vrsqrt.f32 %v454_v14 }
 0x44f   :  { %947 = vrsqrt.f32 %v453_v15 }
 0x458   :  { %v946_v19 = vpop.eup %945 }
 0x459   :  { %v948_v21 = vpop.eup %947  ;;  %v458_v22 = vmul.f32 %v946_v19, %v452_v17 }
 0x45a   :  { %v457_v23 = vmul.f32 %v948_v21, %v451_v20 }
 0x45b   :  { %v460_v24 = vmul.f32 %v1250_v16, %v458_v22 }
 0x45c   :  { %v459_v25 = vmul.f32 %v1250_v16, %v457_v23  ;;  %v592_v16 = vld [vmem:[%s1320_s9] ss:$0 sm:$0xff] }
 0x45d   :  { %v462_v27 = vadd.f32 %v1255_v18, %v460_v24 }
 0x45e   :  { %v461_v28 = vadd.f32 %v1255_v18, %v459_v25 }
 0x45f   :  { %v464_v30 = vmax.f32 %v462_v27, 0.0 }
 0x460   :  { %v463_v32 = vmax.f32 %v461_v28, 0.0 }
 0x461   :  { %v466_v34 = vadd.f32 %v464_v30, %v1270_v33 }
 0x462   :  { %v465_v35 = vadd.f32 %v463_v32, %v1264_v29 }
 0x463   :  { %v468_v37 = vmul.f32 %v466_v34, %v1266_v31 }
 0x464   :  { %v467_v36 = vmul.f32 %v465_v35, %v1260_v26 }
 0x466   :  { %802 = vmatprep.mubr.f32.mxu1 %v467_v36 }
 0x467   :  { %803 = vmatmul.mubr.f32.vlgmr.msra.gmra.mrb[2].mxu1 %v468_v37 }
 0x53a   :  { %v804_v38 = vpop.f32.mrb[2].mxu1 }
 0x53b   :  { %v564_v18 = vadd.f32 %v804_v38, %v592_v16  ;;  %v558_v39 = vpop.f32.mrb[3].mxu1 }
 0x53c   :  { %v559_v40 = vadd.f32 %v592_v16, %v558_v39 }
 0x53d   :  { %568 = vst [vmem:[#allocation11 + $0x8] sm:$0xff] %v564_v18 }
 0x53e   :  { %567 = vst [vmem:[#allocation11] sm:$0xff] %v559_v40 }
 0x53f   :  { %1070 = shalt.err (!%p1067_p2)
}
 0x540   :  { %s1071_s9 = scalar_lea.hbm %s1321_s10, 256 }
 0x541   :  { %p1072_p3 = scmp.ne.s32.totalorder %s1321_s10, %s1071_s9  ;;  %p1075_p4 = scmp.lt.u32.totalorder %s1071_s9, %s1321_s10 }
 0x543   :  { %p1077_p5 = pnand %p1075_p4, %p1072_p3 }
 0x545   :  { %1080 = shalt.err (!%p1077_p5)
}
 0x546   :  { %580 = dma.vmem_to_hbm [thread:$0]  %s575_s19, 256, %s1321_s10, [#allocation4], %s1091_s25, %s1091_s25, %s1092_s26  }
 0x547   :  { %1087 = dma.done.wait [#allocation4], 256  }
 0x548   :  { %1088 = vsyncadd [#allocation4], 4294967040 }
 0x549   :  { %584 = vsyncpa [#allocation3], 1 }
 0x54a   :  { %585 = vsyncpa [#allocation6], 1 }
 0x54b   :  { %586 = vsyncpa [#allocation9], 1 }
 0x54c   :  { %587 = vsyncpa [#allocation4], 1 }

</bundles_post_ra>
